<compile_context>
chip_gen: v7x
topology: tpu7x:2x2x1
jax: 0.10.0
libtpu: 0.0.40
codegen_flags: <defaults>
</compile_context>

<pallas_src>
import functools
import math

import jax
import jax.numpy as jnp
from jax import lax
from jax.experimental import pallas as pl
from jax.experimental.pallas import tpu as pltpu


# ----------------------------- VMEM budgeting ------------------------------

def _physical_vmem_bytes():
    try:
        info = pltpu.get_tpu_info()
        cap = int(getattr(info, "vmem_capacity_bytes", 0))
        if cap > 0:
            return cap
    except Exception:
        pass
    return 128 * 1024 * 1024


_VMEM_PHYS = _physical_vmem_bytes()
# Leave ~25% headroom for Mosaic internal scratch / semaphores / DMA buffers
# (v7x: 64 MiB per TensorCore -> 48 MiB; v5e/v6e: 128 MiB -> 96 MiB).
_VMEM_LIMIT = min(int(_VMEM_PHYS * 3 // 4), 96 * 1024 * 1024)
_VMEM_BUDGET = _VMEM_LIMIT - 4 * 1024 * 1024   # per-call tile-sizing budget


def _row_tile(M, fixed_bytes, per_row_bytes):
    """Largest row tile whose (double-buffered) footprint fits the budget."""
    for t in (1024, 512, 256, 128):
        if M % t == 0 and fixed_bytes + t * per_row_bytes <= _VMEM_BUDGET:
            return t
    return M


def _col_tile(N):
    if N <= 1024:
        return N
    for t in (1024, 512, 256, 128):
        if N % t == 0:
            return t
    return N


def _kv_tile(S):
    for t in (512, 256, 128):
        if S % t == 0:
            return t
    return S


def _gelu(y):
    # TODO(synk): BERT uses exact erf-GELU; tanh approximation used here.
    c = math.sqrt(2.0 / math.pi)
    return 0.5 * y * (1.0 + jnp.tanh(c * (y + 0.044715 * y * y * y)))


# ----------------------------- Pallas kernels ------------------------------

def _linear_kernel(x_ref, w_ref, b_ref, o_ref, *, activation):
    y = jnp.dot(x_ref[...], w_ref[...], preferred_element_type=jnp.float32)
    y = y + b_ref[...]                                     # fp32 epilogue
    if activation == "gelu":
        y = _gelu(y)
    o_ref[...] = y.astype(o_ref.dtype)


def linear(x, w, b, activation=None):
    """y = act(x @ w + b); x [M,K] bf16, w [K,N] bf16, b [1,N] f32 -> bf16."""
    M, K = x.shape
    N = w.shape[1]
    tn = _col_tile(N)
    tm = _row_tile(M, fixed_bytes=2 * K * tn * 2,
                   per_row_bytes=2 * (K + tn) * 2)
    gm, gn = M // tm, N // tn
    kern = functools.partial(_linear_kernel, activation=activation)
    cost = pl.CostEstimate(
        flops=2 * M * K * N,
        transcendentals=M * N if activation == "gelu" else 0,
        bytes_accessed=(M * K + K * N + M * N) * 2 + N * 4)

    # Keep the more heavily re-fetched operand stationary: activation-stationary
    # order re-streams the weight gm times; weight-stationary re-streams x gn
    # times.  Pick whichever minimizes HBM re-read traffic.
    w_bytes, x_bytes = K * N * 2, M * K * 2
    if gm * w_bytes <= gn * x_bytes:
        grid = (gm, gn)
        x_spec = pl.BlockSpec((tm, K), lambda i, j: (i, 0))
        w_spec = pl.BlockSpec((K, tn), lambda i, j: (0, j))
        b_spec = pl.BlockSpec((1, tn), lambda i, j: (0, j))
        o_spec = pl.BlockSpec((tm, tn), lambda i, j: (i, j))
    else:
        grid = (gn, gm)
        x_spec = pl.BlockSpec((tm, K), lambda j, i: (i, 0))
        w_spec = pl.BlockSpec((K, tn), lambda j, i: (0, j))
        b_spec = pl.BlockSpec((1, tn), lambda j, i: (0, j))
        o_spec = pl.BlockSpec((tm, tn), lambda j, i: (i, j))

    return pl.pallas_call(
        kern,
        out_shape=jax.ShapeDtypeStruct((M, N), jnp.bfloat16),
        grid=grid,
        in_specs=[x_spec, w_spec, b_spec],
        out_specs=o_spec,
        compiler_params=pltpu.CompilerParams(
            dimension_semantics=("parallel", "parallel"),
            vmem_limit_bytes=_VMEM_LIMIT),
        cost_estimate=cost,
    )(x, w, b)


def _linear_add_ln_kernel(x_ref, w_ref, b_ref, r_ref, g_ref, bln_ref, o_ref,
                          *, eps):
    y = jnp.dot(x_ref[...], w_ref[...], preferred_element_type=jnp.float32)
    y = y + b_ref[...] + r_ref[...].astype(jnp.float32)    # bias + residual
    mean = jnp.mean(y, axis=-1, keepdims=True)
    yc = y - mean
    var = jnp.mean(yc * yc, axis=-1, keepdims=True)
    inv = lax.rsqrt(var + eps)
    o_ref[...] = (yc * inv * g_ref[...] + bln_ref[...]).astype(o_ref.dtype)


def linear_add_layernorm(x, w, b, residual, gamma, beta, eps=1e-12):
    """LayerNorm((x @ w + b) + residual); LN over the full output row."""
    M, K = x.shape
    N = w.shape[1]
    tm = _row_tile(M, fixed_bytes=2 * K * N * 2,
                   per_row_bytes=2 * (K + 3 * N) * 2)
    kern = functools.partial(_linear_add_ln_kernel, eps=eps)
    cost = pl.CostEstimate(
        flops=2 * M * K * N + 10 * M * N,
        transcendentals=M,
        bytes_accessed=(M * K + K * N + 2 * M * N) * 2 + 3 * N * 4)
    return pl.pallas_call(
        kern,
        out_shape=jax.ShapeDtypeStruct((M, N), jnp.bfloat16),
        grid=(M // tm,),
        in_specs=[
            pl.BlockSpec((tm, K), lambda i: (i, 0)),
            pl.BlockSpec((K, N), lambda i: (0, 0)),
            pl.BlockSpec((1, N), lambda i: (0, 0)),
            pl.BlockSpec((tm, N), lambda i: (i, 0)),
            pl.BlockSpec((1, N), lambda i: (0, 0)),
            pl.BlockSpec((1, N), lambda i: (0, 0)),
        ],
        out_specs=pl.BlockSpec((tm, N), lambda i: (i, 0)),
        compiler_params=pltpu.CompilerParams(
            dimension_semantics=("parallel",),
            vmem_limit_bytes=_VMEM_LIMIT),
        cost_estimate=cost,
    )(x, w, b, residual, gamma, beta)


def _add_ln_kernel(x_ref, r_ref, g_ref, b_ref, o_ref, *, eps):
    y = x_ref[...] + r_ref[...]
    mean = jnp.mean(y, axis=-1, keepdims=True)
    yc = y - mean
    var = jnp.mean(yc * yc, axis=-1, keepdims=True)
    inv = lax.rsqrt(var + eps)
    o_ref[...] = (yc * inv * g_ref[...] + b_ref[...]).astype(o_ref.dtype)


def add_layernorm(x, residual, gamma, beta, eps=1e-12):
    """LayerNorm(x + residual) — used once for the embedding sum (fp32 in)."""
    M, H = x.shape
    tm = _row_tile(M, fixed_bytes=0, per_row_bytes=2 * 3 * H * 4)
    kern = functools.partial(_add_ln_kernel, eps=eps)
    return pl.pallas_call(
        kern,
        out_shape=jax.ShapeDtypeStruct((M, H), jnp.bfloat16),
        grid=(M // tm,),
        in_specs=[
            pl.BlockSpec((tm, H), lambda i: (i, 0)),
            pl.BlockSpec((tm, H), lambda i: (i, 0)),
            pl.BlockSpec((1, H), lambda i: (0, 0)),
            pl.BlockSpec((1, H), lambda i: (0, 0)),
        ],
        out_specs=pl.BlockSpec((tm, H), lambda i: (i, 0)),
        compiler_params=pltpu.CompilerParams(
            dimension_semantics=("parallel",),
            vmem_limit_bytes=_VMEM_LIMIT),
    )(x, residual, gamma, beta)


def _qkv_kernel(x_ref, w_ref, b_ref, o_ref):
    y = jnp.dot(x_ref[...], w_ref[...], preferred_element_type=jnp.float32)
    o_ref[...] = (y + b_ref[...]).astype(o_ref.dtype)


def qkv_projection(x, w, b, n_heads):
    """Head-major fused QKV projection.

    x: [M, H] bf16; w: [3, n_heads, H, Dh] bf16; b: [3, n_heads, 1, Dh] f32.
    Writes [3, n_heads, M, Dh] bf16 straight from the out_spec so attention
    and the output projection get full-block, lane-dense loads (no intra-block
    head slicing and no split/merge-heads transposes).
    """
    M, H = x.shape
    Dh = w.shape[-1]
    tm = _row_tile(M, fixed_bytes=2 * H * Dh * 2,
                   per_row_bytes=2 * (H + Dh) * 2)
    cost = pl.CostEstimate(
        flops=2 * M * H * 3 * H,
        transcendentals=0,
        bytes_accessed=(M * H + 3 * H * H + 3 * M * H) * 2)
    return pl.pallas_call(
        _qkv_kernel,
        out_shape=jax.ShapeDtypeStruct((3, n_heads, M, Dh), jnp.bfloat16),
        grid=(M // tm, 3 * n_heads),
        in_specs=[
            pl.BlockSpec((tm, H), lambda i, j: (i, 0)),
            pl.BlockSpec((None, None, H, Dh),
                         lambda i, j: (j // n_heads, j % n_heads, 0, 0)),
            pl.BlockSpec((None, None, 1, Dh),
                         lambda i, j: (j // n_heads, j % n_heads, 0, 0)),
        ],
        out_specs=pl.BlockSpec((None, None, tm, Dh),
                               lambda i, j: (j // n_heads, j % n_heads, i, 0)),
        compiler_params=pltpu.CompilerParams(
            dimension_semantics=("parallel", "parallel"),
            vmem_limit_bytes=_VMEM_LIMIT),
        cost_estimate=cost,
    )(x, w, b)


def _flash_attn_kernel(q_ref, k_ref, v_ref, o_ref, m_sc, l_sc, acc_sc):
    kv = pl.program_id(2)

    @pl.when(kv == 0)
    def _():
        m_sc[...] = jnp.full(m_sc.shape, -jnp.inf, m_sc.dtype)
        l_sc[...] = jnp.zeros(l_sc.shape, l_sc.dtype)
        acc_sc[...] = jnp.zeros(acc_sc.shape, acc_sc.dtype)

    # TODO(synk): no attention mask (all-ones mask assumed for unpadded input).
    # QK^T without an explicit transpose: contract last axes on the MXU.
    s = lax.dot_general(q_ref[...], k_ref[...], (((1,), (1,)), ((), ())),
                        preferred_element_type=jnp.float32)        # (S, tk)
    m_prev = m_sc[...]
    m_new = jnp.maximum(m_prev, jnp.max(s, axis=-1, keepdims=True))
    alpha = jnp.exp(m_prev - m_new)
    p = jnp.exp(s - m_new)
    l_sc[...] = alpha * l_sc[...] + jnp.sum(p, axis=-1, keepdims=True)
    acc_sc[...] = alpha * acc_sc[...] + jnp.dot(
        p.astype(jnp.bfloat16), v_ref[...], preferred_element_type=jnp.float32)
    m_sc[...] = m_new

    @pl.when(kv == pl.num_programs(2) - 1)
    def _():
        o_ref[...] = (acc_sc[...] * pl.reciprocal(l_sc[...], approx=True)
                      ).astype(o_ref.dtype)


def attention(qkv, n_heads, B, S, Dh):
    """Flash-style MHA on the head-major QKV tensor.

    qkv: [3, n_heads, B, S, Dh] bf16 (1/sqrt(Dh) already folded into Q).
    Returns head-major context [n_heads, B, S, Dh] bf16.
    """
    tk = _kv_tile(S)
    n_kv = S // tk
    cost = pl.CostEstimate(
        flops=4 * B * n_heads * S * S * Dh,
        transcendentals=B * n_heads * S * S,
        bytes_accessed=4 * n_heads * B * S * Dh * 2)
    return pl.pallas_call(
        _flash_attn_kernel,
        out_shape=jax.ShapeDtypeStruct((n_heads, B, S, Dh), jnp.bfloat16),
        grid=(B, n_heads, n_kv),
        in_specs=[
            pl.BlockSpec((None, None, None, S, Dh),
                         lambda b, h, kv: (0, h, b, 0, 0)),
            pl.BlockSpec((None, None, None, tk, Dh),
                         lambda b, h, kv: (1, h, b, kv, 0)),
            pl.BlockSpec((None, None, None, tk, Dh),
                         lambda b, h, kv: (2, h, b, kv, 0)),
        ],
        out_specs=pl.BlockSpec((None, None, S, Dh),
                               lambda b, h, kv: (h, b, 0, 0)),
        scratch_shapes=[
            pltpu.VMEM((S, 1), jnp.float32),       # running max
            pltpu.VMEM((S, 1), jnp.float32),       # running denom
            pltpu.VMEM((S, Dh), jnp.float32),      # running ctx accumulator
        ],
        compiler_params=pltpu.CompilerParams(
            dimension_semantics=("parallel", "parallel", "arbitrary"),
            vmem_limit_bytes=_VMEM_LIMIT),
        cost_estimate=cost,
    )(qkv, qkv, qkv)


def _attn_out_ln_kernel(ctx_ref, w_ref, b_ref, r_ref, g_ref, bln_ref, o_ref,
                        *, n_heads, eps):
    y = b_ref[...] + r_ref[...].astype(jnp.float32)
    # Per-head (tm,Dh) x (Dh,H) matmuls accumulate the merged output projection
    # directly from the head-major layout — no merge-heads transpose.
    for h in range(n_heads):
        y = y + jnp.dot(ctx_ref[h], w_ref[h],
                        preferred_element_type=jnp.float32)
    mean = jnp.mean(y, axis=-1, keepdims=True)
    yc = y - mean
    var = jnp.mean(yc * yc, axis=-1, keepdims=True)
    inv = lax.rsqrt(var + eps)
    o_ref[...] = (yc * inv * g_ref[...] + bln_ref[...]).astype(o_ref.dtype)


def attn_out_layernorm(ctx, w, b, residual, gamma, beta, eps=1e-12):
    """LayerNorm(concat_heads(ctx) @ W_o + b + residual).

    ctx: [n_heads, M, Dh] bf16 (head-major); w: [n_heads, Dh, H] bf16.
    """
    n_heads, M, Dh = ctx.shape
    H = w.shape[-1]
    tm = _row_tile(M, fixed_bytes=2 * n_heads * Dh * H * 2,
                   per_row_bytes=2 * (n_heads * Dh + 2 * H) * 2)
    kern = functools.partial(_attn_out_ln_kernel, n_heads=n_heads, eps=eps)
    cost = pl.CostEstimate(
        flops=2 * M * H * H + 10 * M * H,
        transcendentals=M,
        bytes_accessed=(3 * M * H + H * H) * 2 + 3 * H * 4)
    return pl.pallas_call(
        kern,
        out_shape=jax.ShapeDtypeStruct((M, H), jnp.bfloat16),
        grid=(M // tm,),
        in_specs=[
            pl.BlockSpec((n_heads, tm, Dh), lambda i: (0, i, 0)),
            pl.BlockSpec((n_heads, Dh, H), lambda i: (0, 0, 0)),
            pl.BlockSpec((1, H), lambda i: (0, 0)),
            pl.BlockSpec((tm, H), lambda i: (i, 0)),
            pl.BlockSpec((1, H), lambda i: (0, 0)),
            pl.BlockSpec((1, H), lambda i: (0, 0)),
        ],
        out_specs=pl.BlockSpec((tm, H), lambda i: (i, 0)),
        compiler_params=pltpu.CompilerParams(
            dimension_semantics=("parallel",),
            vmem_limit_bytes=_VMEM_LIMIT),
        cost_estimate=cost,
    )(ctx, w, b, residual, gamma, beta)


def _pooler_cls_kernel(x_ref, wp_ref, bp_ref, wc_ref, bc_ref, o_ref):
    pooled = jnp.tanh(
        jnp.dot(x_ref[...], wp_ref[...], preferred_element_type=jnp.float32)
        + bp_ref[...])
    pred = jnp.dot(pooled.astype(jnp.bfloat16), wc_ref[...],
                   preferred_element_type=jnp.float32) + bc_ref[...]
    o_ref[...] = pred.astype(o_ref.dtype)


def pooler_classifier(cls_tok, wp, bp, wc_pad, bc_pad):
    """pred = tanh(cls @ wp + bp) @ wc + bc; classifier padded to 128 lanes."""
    B, H = cls_tok.shape
    P = wc_pad.shape[1]
    out = pl.pallas_call(
        _pooler_cls_kernel,
        out_shape=jax.ShapeDtypeStruct((B, P), jnp.float32),
        grid=(1,),
        in_specs=[
            pl.BlockSpec((B, H), lambda i: (0, 0)),
            pl.BlockSpec((H, H), lambda i: (0, 0)),
            pl.BlockSpec((1, H), lambda i: (0, 0)),
            pl.BlockSpec((H, P), lambda i: (0, 0)),
            pl.BlockSpec((1, P), lambda i: (0, 0)),
        ],
        out_specs=pl.BlockSpec((B, P), lambda i: (0, 0)),
        compiler_params=pltpu.CompilerParams(
            dimension_semantics=("arbitrary",),
            vmem_limit_bytes=_VMEM_LIMIT),
    )(cls_tok, wp, bp, wc_pad, bc_pad)
    return out[:, :1]                   # lane-dense store inside, slice outside


# ----------------------------- Model (glue) --------------------------------

def init_params(key, vocab, max_pos, type_vocab, hidden, n_heads, n_layers,
                intermediate):
    Dh = hidden // n_heads
    keys = iter(jax.random.split(key, 8 * n_layers + 16))

    def nrm(shape, scale=0.02):
        return jax.random.normal(next(keys), shape, jnp.float32) * scale

    params = {
        "word_emb": nrm((vocab, hidden)),
        "pos_emb": nrm((max_pos, hidden)),
        "type_emb": nrm((type_vocab, hidden)),
        "emb_ln_g": jnp.ones((1, hidden), jnp.float32),
        "emb_ln_b": jnp.zeros((1, hidden), jnp.float32),
        "layers": [],
    }
    att_scale = 1.0 / math.sqrt(Dh)
    for _ in range(n_layers):
        lp = {}
        # Head-major QKV weights [3, n_heads, H, Dh] with the 1/sqrt(Dh)
        # attention scale folded into the Q projection (checkpoint-conversion-
        # time fold; no per-step work in the kernels).
        qkv_w = nrm((3, n_heads, hidden, Dh)).at[0].multiply(att_scale)
        lp["qkv_w"] = qkv_w.astype(jnp.bfloat16)
        lp["qkv_b"] = jnp.zeros((3, n_heads, 1, Dh), jnp.float32)
        lp["o_w"] = nrm((n_heads, Dh, hidden)).astype(jnp.bfloat16)
        lp["o_b"] = jnp.zeros((1, hidden), jnp.float32)
        lp["ln1_g"] = jnp.ones((1, hidden), jnp.float32)
        lp["ln1_b"] = jnp.zeros((1, hidden), jnp.float32)
        lp["i_w"] = nrm((hidden, intermediate)).astype(jnp.bfloat16)
        lp["i_b"] = jnp.zeros((1, intermediate), jnp.float32)
        lp["f_w"] = nrm((intermediate, hidden)).astype(jnp.bfloat16)
        lp["f_b"] = jnp.zeros((1, hidden), jnp.float32)
        lp["ln2_g"] = jnp.ones((1, hidden), jnp.float32)
        lp["ln2_b"] = jnp.zeros((1, hidden), jnp.float32)
        params["layers"].append(lp)
    params["pooler_w"] = nrm((hidden, hidden)).astype(jnp.bfloat16)
    params["pooler_b"] = jnp.zeros((1, hidden), jnp.float32)
    # classifier: torch.nn.Linear(hidden_dim, 1), zero-padded to 128 lanes.
    cls_w = nrm((hidden, 1))
    params["cls_w_pad"] = jnp.pad(cls_w, ((0, 0), (0, 127))).astype(jnp.bfloat16)
    params["cls_b_pad"] = jnp.zeros((1, 128), jnp.float32)
    return params


def bert_classifier_forward(params, input_ids, token_type_ids, n_heads,
                            output_hidden_states=False):
    B, S = input_ids.shape
    H = params["word_emb"].shape[1]
    Dh = H // n_heads
    M = B * S

    # --- embeddings (table lookups are XLA gathers; sum + LayerNorm in Pallas)
    we = jnp.take(params["word_emb"], input_ids, axis=0)           # [B, S, H]
    te = jnp.take(params["type_emb"], token_type_ids, axis=0)      # [B, S, H]
    pe = jnp.broadcast_to(params["pos_emb"][:S][None], (B, S, H))
    x = add_layernorm((we + te).reshape(M, H), pe.reshape(M, H),
                      params["emb_ln_g"], params["emb_ln_b"])      # bf16 [M,H]

    # --- transformer encoder layers (all-ones attention mask assumed) ---
    for lp in params["layers"]:
        qkv = qkv_projection(x, lp["qkv_w"], lp["qkv_b"], n_heads)  # [3,nh,M,Dh]
        ctx = attention(qkv.reshape(3, n_heads, B, S, Dh),
                        n_heads, B, S, Dh)                          # [nh,B,S,Dh]
        x = attn_out_layernorm(ctx.reshape(n_heads, M, Dh), lp["o_w"],
                               lp["o_b"], x, lp["ln1_g"], lp["ln1_b"])
        inter = linear(x, lp["i_w"], lp["i_b"], activation="gelu")  # [M, 4H]
        x = linear_add_layernorm(inter, lp["f_w"], lp["f_b"], x,
                                 lp["ln2_g"], lp["ln2_b"])          # [M, H]

    last_hidden_state = x.reshape(B, S, H)

    # --- pooler_output = tanh(W_p @ CLS + b_p); pred = classifier(pooler) ---
    cls_tok = last_hidden_state[:, 0]                               # [B, H] bf16
    pred = pooler_classifier(cls_tok, params["pooler_w"], params["pooler_b"],
                             params["cls_w_pad"], params["cls_b_pad"])  # [B, 1]

    if output_hidden_states:
        return pred, last_hidden_state.astype(jnp.float32)
    return pred


# --------------------------------- main -------------------------------------

if __name__ == "__main__":
    key = jax.random.PRNGKey(0)
    pkey, dkey = jax.random.split(key)

    # Small synthetic BERT config.
    B, S = 2, 8
    vocab, max_pos, type_vocab = 100, 16, 2
    hidden, n_layers, n_heads, intermediate = 128, 2, 2, 256

    params = init_params(pkey, vocab, max_pos, type_vocab, hidden, n_heads,
                         n_layers, intermediate)
    input_ids = jax.random.randint(dkey, (B, S), 0, vocab, dtype=jnp.int32)
    token_type_ids = jnp.zeros((B, S), jnp.int32)

    pred, last_hidden = bert_classifier_forward(
        params, input_ids, token_type_ids, n_heads, output_hidden_states=True)
    jax.block_until_ready((pred, last_hidden))

    assert pred.shape == (B, 1) and pred.dtype == jnp.float32
    assert last_hidden.shape == (B, S, hidden) and last_hidden.dtype == jnp.float32
    print("KERNEL_OK")
</pallas_src>

<mosaic_0001>
module attributes {stable_mosaic.version = 11 : i64} {
  func.func @_add_ln_kernel(%arg0: i32, %arg1: memref<16x128xf32, #tpu.memory_space<vmem>>, %arg2: memref<16x128xf32, #tpu.memory_space<vmem>>, %arg3: memref<1x128xf32, #tpu.memory_space<vmem>>, %arg4: memref<1x128xf32, #tpu.memory_space<vmem>>, %arg5: memref<16x128xbf16, #tpu.memory_space<vmem>>) attributes {dimension_semantics = [#tpu.dimension_semantics<parallel>], iteration_bounds = array<i64: 1>, scalar_prefetch = 0 : i64, scratch_operands = 0 : i64, tpu.core_type = #tpu.core_type<tc>, window_params = [{transform_indices = @transform_0, window_bounds = array<i64: 16, 128>}, {transform_indices = @transform_1, window_bounds = array<i64: 16, 128>}, {pipeline_mode = #tpu.pipeline_mode<synchronous>, transform_indices = @transform_2, window_bounds = array<i64: 1, 128>}, {pipeline_mode = #tpu.pipeline_mode<synchronous>, transform_indices = @transform_3, window_bounds = array<i64: 1, 128>}, {transform_indices = @transform_4, window_bounds = array<i64: 16, 128>}]} {
    %c0 = arith.constant 0 : index
    %c0_0 = arith.constant 0 : index
    %0 = vector.load %arg1[%c0, %c0_0] : memref<16x128xf32, #tpu.memory_space<vmem>>, vector<16x128xf32>
    %c0_1 = arith.constant 0 : index
    %c0_2 = arith.constant 0 : index
    %1 = vector.load %arg2[%c0_1, %c0_2] : memref<16x128xf32, #tpu.memory_space<vmem>>, vector<16x128xf32>
    %2 = arith.addf %0, %1 : vector<16x128xf32>
    %cst = arith.constant dense<0.000000e+00> : vector<16xf32>
    %3 = vector.multi_reduction <add>, %2, %cst [1] : vector<16x128xf32> to vector<16xf32>
    %4 = vector.shape_cast %3 : vector<16xf32> to vector<16x1xf32>
    %cst_3 = arith.constant 1.280000e+02 : f32
    %5 = vector.broadcast %cst_3 : f32 to vector<16x1xf32>
    %6 = arith.divf %4, %5 : vector<16x1xf32>
    %7 = vector.broadcast %6 : vector<16x1xf32> to vector<16x128xf32>
    %8 = arith.subf %2, %7 : vector<16x128xf32>
    %9 = arith.mulf %8, %8 : vector<16x128xf32>
    %cst_4 = arith.constant dense<0.000000e+00> : vector<16xf32>
    %10 = vector.multi_reduction <add>, %9, %cst_4 [1] : vector<16x128xf32> to vector<16xf32>
    %11 = vector.shape_cast %10 : vector<16xf32> to vector<16x1xf32>
    %cst_5 = arith.constant 1.280000e+02 : f32
    %12 = vector.broadcast %cst_5 : f32 to vector<16x1xf32>
    %13 = arith.divf %11, %12 : vector<16x1xf32>
    %cst_6 = arith.constant 9.99999996E-13 : f32
    %14 = vector.broadcast %cst_6 : f32 to vector<16x1xf32>
    %15 = arith.addf %13, %14 : vector<16x1xf32>
    %16 = math.rsqrt %15 : vector<16x1xf32>
    %17 = vector.broadcast %16 : vector<16x1xf32> to vector<16x128xf32>
    %18 = arith.mulf %8, %17 : vector<16x128xf32>
    %c0_7 = arith.constant 0 : index
    %c0_8 = arith.constant 0 : index
    %19 = vector.load %arg3[%c0_7, %c0_8] : memref<1x128xf32, #tpu.memory_space<vmem>>, vector<1x128xf32>
    %20 = vector.broadcast %19 : vector<1x128xf32> to vector<16x128xf32>
    %21 = arith.mulf %18, %20 : vector<16x128xf32>
    %c0_9 = arith.constant 0 : index
    %c0_10 = arith.constant 0 : index
    %22 = vector.load %arg4[%c0_9, %c0_10] : memref<1x128xf32, #tpu.memory_space<vmem>>, vector<1x128xf32>
    %23 = vector.broadcast %22 : vector<1x128xf32> to vector<16x128xf32>
    %24 = arith.addf %21, %23 : vector<16x128xf32>
    %25 = arith.truncf %24 : vector<16x128xf32> to vector<16x128xbf16>
    %c0_11 = arith.constant 0 : index
    %c0_12 = arith.constant 0 : index
    %26 = vector.load %arg5[%c0_11, %c0_12] : memref<16x128xbf16, #tpu.memory_space<vmem>>, vector<16x128xbf16>
    tpu.vector_store %arg5[%c0_11, %c0_12], %25 {strides = array<i32>} : memref<16x128xbf16, #tpu.memory_space<vmem>>, vector<16x128xbf16>,
    return
  }
  func.func @transform_0(%arg0: i32) -> (i32, i32) {
    %c0_i32 = arith.constant 0 : i32
    %c0_i32_0 = arith.constant 0 : i32
    return %arg0, %c0_i32 : i32, i32
  }
  func.func @transform_1(%arg0: i32) -> (i32, i32) {
    %c0_i32 = arith.constant 0 : i32
    %c0_i32_0 = arith.constant 0 : i32
    return %arg0, %c0_i32 : i32, i32
  }
  func.func @transform_2(%arg0: i32) -> (i32, i32) {
    %c0_i32 = arith.constant 0 : i32
    %c0_i32_0 = arith.constant 0 : i32
    %c0_i32_1 = arith.constant 0 : i32
    return %c0_i32, %c0_i32_0 : i32, i32
  }
  func.func @transform_3(%arg0: i32) -> (i32, i32) {
    %c0_i32 = arith.constant 0 : i32
    %c0_i32_0 = arith.constant 0 : i32
    %c0_i32_1 = arith.constant 0 : i32
    return %c0_i32, %c0_i32_0 : i32, i32
  }
  func.func @transform_4(%arg0: i32) -> (i32, i32) {
    %c0_i32 = arith.constant 0 : i32
    %c0_i32_0 = arith.constant 0 : i32
    return %arg0, %c0_i32 : i32, i32
  }
}

</mosaic_0001>

<bundles_post_ra>
// kernel: tpu_custom_call.1
= control target key start
LH: loop header
LB: loop body
LE: loop exit
PB: predicated region body
PF: predicated region fallthrough
CT: control target
= control target key end

     0   :  { %9 = vsyncpa [#allocation3], 0  ;;  %s388_s0 = inlined_call_operand.hbm [shape: f32[16,128], index: 0, kind: input, shape index: {}]   ;;  %s389_s1 = inlined_call_operand.hbm [shape: f32[16,128], index: 1, kind: input, shape index: {}]   ;;  %s390_s2 = inlined_call_operand.hbm [shape: f32[1,128], index: 2, kind: input, shape index: {}]   ;;  %s391_s3 = inlined_call_operand.hbm [shape: f32[1,128], index: 3, kind: input, shape index: {}]   ;;  %s392_s4 = inlined_call_operand.hbm [shape: bf16[16,128], index: 4, kind: output, shape index: {}]  }
   0x1   :  { %10 = vsyncpa [#allocation6], 0 }
   0x2   :  { %11 = vsyncpa [#allocation9], 0 }
   0x3   :  { %12 = vsyncpa [#allocation4], 0  ;;  %s287_s15 = smov [#allocation5]   ;;  %s288_s17 = smov [#allocation2]  }
   0x4   :  { %s30_s16 = sshll.u32 %s287_s15, 4  ;;  %s18_s18 = sshll.u32 %s288_s17, 4  ;;  %s31_s16 = int_to_ptr.vmem [resolvable:$true] %s30_s16  ;;  %s321_s18 = int_to_ptr.vmem [resolvable:$true] %s18_s18 }
   0x5   :  { %s169_s21 = scalar_lea.hbm %s389_s1, 256 }
   0x6   :  { %p170_p0 = scmp.ne.s32.totalorder %s389_s1, %s169_s21  ;;  %p173_p1 = scmp.lt.u32.totalorder %s169_s21, %s389_s1 }
   0x8   :  { %p175_p2 = pnand %p173_p1, %p170_p0 }
   0xa   :  { %178 = shalt.err (!%p175_p2)
}
   0xb   :  { %s179_s26 = scalar_lea.vmem %s31_s16, 256  ;;  %p184_p4 = scmp.lt.s32.totalorder %s31_s16, %s31_s16 }
   0xc   :  { %p180_p3 = scmp.ne.s32.totalorder %s31_s16, %s179_s26  ;;  %p185_p5 = scmp.lt.s32.totalorder %s179_s26, %s179_s26 }
   0xe   :  { %p186_p6 = por %p185_p5, %p184_p4 }
  0x10   :  { %p187_p7 = pnand %p186_p6, %p180_p3 }
  0x12   :  { %190 = shalt.err (!%p187_p7)
}
  0x13   :  { %s289_s27 = smov 128   ;;  %s290_s28 = smov 8  }
  0x14   :  { %36 = dma.hbm_to_vmem [thread:$0]  %s389_s1, 256, %s31_s16, [#allocation6], %s289_s27, %s289_s27, %s290_s28  }
  0x15   :  { %s191_s7 = scalar_lea.hbm %s388_s0, 256 }
  0x16   :  { %p192_p8 = scmp.ne.s32.totalorder %s388_s0, %s191_s7  ;;  %p195_p9 = scmp.lt.u32.totalorder %s191_s7, %s388_s0 }
  0x18   :  { %p197_p10 = pnand %p195_p9, %p192_p8 }
  0x1a   :  { %200 = shalt.err (!%p197_p10)
}
  0x1b   :  { %s201_s12 = scalar_lea.vmem %s321_s18, 256  ;;  %p206_p12 = scmp.lt.s32.totalorder %s321_s18, %s321_s18 }
  0x1c   :  { %p202_p11 = scmp.ne.s32.totalorder %s321_s18, %s201_s12  ;;  %p207_p13 = scmp.lt.s32.totalorder %s201_s12, %s201_s12 }
  0x1e   :  { %p208_p0 = por %p207_p13, %p206_p12 }
  0x20   :  { %p209_p1 = pnand %p208_p0, %p202_p11 }
  0x22   :  { %212 = shalt.err (!%p209_p1)
}
  0x23   :  { %24 = dma.hbm_to_vmem [thread:$0]  %s388_s0, 256, %s321_s18, [#allocation3], %s289_s27, %s289_s27, %s290_s28  }
  0x24   :  { %s291_s14 = smov [#allocation7]   ;;  %s292_s16 = smov [#allocation8]  }
  0x25   :  { %s43_s15 = sshll.u32 %s291_s14, 4  ;;  %s53_s17 = sshll.u32 %s292_s16, 4  ;;  %s44_s15 = int_to_ptr.vmem [resolvable:$true] %s43_s15  ;;  %s54_s17 = int_to_ptr.vmem [resolvable:$true] %s53_s17 }
  0x26   :  { %s213_s21 = scalar_lea.hbm %s390_s2, 16 }
  0x27   :  { %p214_p2 = scmp.ne.s32.totalorder %s390_s2, %s213_s21  ;;  %p217_p3 = scmp.lt.u32.totalorder %s213_s21, %s390_s2 }
  0x29   :  { %p219_p4 = pnand %p217_p3, %p214_p2 }
  0x2b   :  { %222 = shalt.err (!%p219_p4)
}
  0x2c   :  { %s223_s0 = scalar_lea.vmem %s44_s15, 16  ;;  %s227_s18 = scalar_lea.vmem %s44_s15, 32 }
  0x2d   :  { %p224_p5 = scmp.ne.s32.totalorder %s44_s15, %s223_s0  ;;  %p228_p6 = scmp.lt.s32.totalorder %s44_s15, %s44_s15 }
  0x2e   :  { %p229_p7 = scmp.lt.s32.totalorder %s227_s18, %s223_s0 }
  0x30   :  { %p230_p8 = por %p229_p7, %p228_p6 }
  0x32   :  { %p231_p9 = pnand %p230_p8, %p224_p5 }
  0x34   :  { %234 = shalt.err (!%p231_p9)
}
  0x35   :  { %46 = dma.hbm_to_vmem [thread:$0]  %s390_s2, 16, %s44_s15, [#allocation6]  }
  0x36   :  { %s235_s30 = scalar_lea.hbm %s391_s3, 16 }
  0x37   :  { %p236_p10 = scmp.ne.s32.totalorder %s391_s3, %s235_s30  ;;  %p239_p11 = scmp.lt.u32.totalorder %s235_s30, %s391_s3 }
  0x39   :  { %p241_p12 = pnand %p239_p11, %p236_p10 }
  0x3b   :  { %244 = shalt.err (!%p241_p12)
}
  0x3c   :  { %s245_s9 = scalar_lea.vmem %s54_s17, 16  ;;  %s249_s10 = scalar_lea.vmem %s54_s17, 32 }
  0x3d   :  { %p246_p13 = scmp.ne.s32.totalorder %s54_s17, %s245_s9  ;;  %p250_p0 = scmp.lt.s32.totalorder %s54_s17, %s54_s17 }
  0x3e   :  { %p251_p1 = scmp.lt.s32.totalorder %s249_s10, %s245_s9 }
  0x40   :  { %p252_p2 = por %p251_p1, %p250_p0 }
  0x42   :  { %p253_p3 = pnand %p252_p2, %p246_p13 }
  0x44   :  { %256 = shalt.err (!%p253_p3)
}
  0x45   :  { %56 = dma.hbm_to_vmem [thread:$0]  %s391_s3, 16, %s54_s17, [#allocation9]  }
  0x46   :  { %279 = dma.done.wait [#allocation3], 256  }
  0x47   :  { %280 = vsyncadd [#allocation3], 4294967040 }
  0x48   :  { %281 = dma.done.wait [#allocation6], 272  }
  0x49   :  { %282 = vsyncadd [#allocation6], 4294967024 }
  0x4a   :  { %283 = dma.done.wait [#allocation9], 16  }
  0x4b   :  { %284 = vsyncadd [#allocation9], 4294967280  ;;  %v69_v0 = vld [vmem:[#allocation2] sm:$0xff]  ;;  %v71_v1 = vld [vmem:[#allocation5] sm:$0xff]  ;;  %s293_s3 = smov [#allocation10]  }
  0x4c   :  { %v70_v2 = vld [vmem:[#allocation2 + $0x8] sm:$0xff]  ;;  %v73_v3 = vadd.f32 %v71_v1, %v69_v0  ;;  %v72_v4 = vld [vmem:[#allocation5 + $0x8] sm:$0xff]  ;;  %v145_v22 = vld [vmem:[#allocation7] ss:$0 sm:$0xff]  ;;  %s131_s12 = sshll.u32 %s293_s3, 4  ;;  %s132_s12 = int_to_ptr.vmem [resolvable:$true] %s131_s12 }
  0x4d   :  { %v74_v5 = vadd.f32 %v72_v4, %v70_v2  ;;  %v146_v26 = vld [vmem:[#allocation8] ss:$0 sm:$0xff]  ;;  %s257_s1 = scalar_lea.vmem %s132_s12, 128  ;;  %p262_p5 = scmp.lt.s32.totalorder %s132_s12, %s132_s12 }
  0x4e   :  { %75 = vadd.xlane.f32.xlu0 %v73_v3  ;;  %p258_p4 = scmp.ne.s32.totalorder %s132_s12, %s257_s1  ;;  %p263_p6 = scmp.lt.s32.totalorder %s257_s1, %s257_s1 }
  0x50   :  { %p264_p7 = por %p263_p6, %p262_p5 }
  0x52   :  { %77 = vadd.xlane.f32.xlu0 %v74_v5  ;;  %p265_p8 = pnand %p264_p7, %p258_p4 }
  0xdb   :  { %v76_v6 = vpop.xlane.xlu0 %75 }
  0xdc   :  { %v80_v7 = vmul.f32 0.0078125, %v76_v6 }
  0xde   :  { %v82_v8 = vsub.f32 %v73_v3, %v80_v7 }
  0xdf   :  { %v78_v9 = vpop.xlane.xlu0 %77 }
  0xe0   :  { %v81_v10 = vmul.f32 0.0078125, %v78_v9  ;;  %v84_v11 = vmul.f32 %v82_v8, %v82_v8 }
  0xe2   :  { %v83_v12 = vsub.f32 %v74_v5, %v81_v10  ;;  %86 = vadd.xlane.f32.xlu1 %v84_v11 }
  0xe4   :  { %v85_v13 = vmul.f32 %v83_v12, %v83_v12 }
  0xe6   :  { %88 = vadd.xlane.f32.xlu1 %v85_v13 }
 0x16f   :  { %v87_v14 = vpop.xlane.xlu1 %86 }
 0x170   :  { %v90_v15 = vmul.f32 0.0078125, %v87_v14 }
 0x172   :  { %v92_v16 = vadd.f32 1e-12, %v90_v15 }
 0x173   :  { %v89_v17 = vpop.xlane.xlu1 %88 }
 0x174   :  { %165 = vrsqrt.f32 %v92_v16  ;;  %v91_v18 = vmul.f32 0.0078125, %v89_v17 }
 0x176   :  { %v93_v19 = vadd.f32 1e-12, %v91_v18 }
 0x178   :  { %167 = vrsqrt.f32 %v93_v19 }
 0x17e   :  { %v166_v20 = vpop.eup %165 }
 0x17f   :  { %v96_v21 = vmul.f32 %v166_v20, %v82_v8 }
 0x181   :  { %v105_v25 = vmul.f32 %v145_v22, %v96_v21 }
 0x182   :  { %v168_v23 = vpop.eup %167 }
 0x183   :  { %v97_v24 = vmul.f32 %v168_v23, %v83_v12  ;;  %v114_v28 = vadd.f32 %v146_v26, %v105_v25 }
 0x185   :  { %v106_v27 = vmul.f32 %v145_v22, %v97_v24 }
 0x187   :  { %v115_v29 = vadd.f32 %v146_v26, %v106_v27 }
 0x189   :  { %v154_v30 = vpack.c.bf16 %v115_v29, %v114_v28 }
 0x18b   :  { %155 = vst [vmem:[#allocation10] sm:$0xff] %v154_v30  }
 0x18c   :  { %268 = shalt.err (!%p265_p8)
}
 0x18d   :  { %s269_s15 = scalar_lea.hbm %s392_s4, 128 }
 0x18e   :  { %p270_p9 = scmp.ne.s32.totalorder %s392_s4, %s269_s15  ;;  %p273_p10 = scmp.lt.u32.totalorder %s269_s15, %s392_s4 }
 0x190   :  { %p275_p11 = pnand %p273_p10, %p270_p9 }
 0x192   :  { %278 = shalt.err (!%p275_p11)
}
 0x193   :  { %s294_s21 = smov 64   ;;  %s295_s22 = smov 4  }
 0x194   :  { %137 = dma.vmem_to_hbm [thread:$0]  %s132_s12, 128, %s392_s4, [#allocation4], %s294_s21, %s294_s21, %s295_s22  }
 0x195   :  { %285 = dma.done.wait [#allocation4], 128  }
 0x196   :  { %286 = vsyncadd [#allocation4], 4294967168 }
 0x197   :  { %141 = vsyncpa [#allocation3], 1 }
 0x198   :  { %142 = vsyncpa [#allocation6], 1 }
 0x199   :  { %143 = vsyncpa [#allocation9], 1 }
 0x19a   :  { %144 = vsyncpa [#allocation4], 1 }

</bundles_post_ra>
